<compile_context>
chip_gen: v7x
topology: tpu7x:2x2x1
jax: 0.10.0
libtpu: 0.0.40
codegen_flags: <defaults>
</compile_context>

<pallas_src>
import jax
import jax.numpy as jnp
from jax import lax
from jax.experimental import pallas as pl
from jax.experimental.pallas import tpu as pltpu


# ----------------------------------------------------------------------------
# small helpers
# ----------------------------------------------------------------------------
def _round_up(v, m):
    return ((v + m - 1) // m) * m


def _tiles(n):
    """(row tile tm, contraction tile tk) over the node dimension."""
    if n >= 1024:
        return 256, 512          # MXU-width aligned, deep k blocks
    if n >= 128:
        return 128, 128
    # tiny demo graphs: one sublane-aligned row tile, single k step
    npad = _round_up(n, 8)
    return 8, npad


def _pad2(a, rows, cols):
    out = jnp.zeros((rows, cols), a.dtype)
    return out.at[: a.shape[0], : a.shape[1]].set(a)


def _vmem_limit(buf_bytes):
    # buf_bytes already accounts for double-buffering of pipelined inputs +
    # scratch; add headroom, stay below v7x's 64 MiB physical VMEM.
    return int(min(60 << 20, max(buf_bytes + (4 << 20), 16 << 20)))


# ----------------------------------------------------------------------------
# Pallas kernels
# ----------------------------------------------------------------------------
def _gcn1_fused_kernel(aw_ref, x_ref, w1t_ref, b1_ref, w2t_ref, g_ref, acc_ref):
    """Stage 1 (fused c1 + pre-application of the `mean` conv weight):
      accumulate AX = Â_w_tile @ X over k-blocks (f32 scratch);
      on the last k-step:  G_tile = relu(AX @ W1ᵀ + b1) @ W2ᵀ."""
    k = pl.program_id(1)

    @pl.when(k == 0)
    def _():
        acc_ref[...] = jnp.zeros_like(acc_ref)

    acc_ref[...] += jnp.dot(aw_ref[...], x_ref[...],
                            preferred_element_type=jnp.float32)

    @pl.when(k == pl.num_programs(1) - 1)
    def _():
        ax = acc_ref[...].astype(w1t_ref.dtype)                # bf16 for MXU
        h = jnp.dot(ax, w1t_ref[...], preferred_element_type=jnp.float32)
        h = jnp.maximum(h + b1_ref[...], 0.0)                  # f32 bias+relu
        g = jnp.dot(h.astype(w2t_ref.dtype), w2t_ref[...],
                    preferred_element_type=jnp.float32)
        g_ref[...] = g.astype(g_ref.dtype)


def _gcn2_kernel(a1_ref, g_ref, b2_ref, mean_ref, acc_ref):
    """Stage 2: mean_tile = Â_1_tile @ G + b2 (k-tiled accumulation)."""
    k = pl.program_id(1)

    @pl.when(k == 0)
    def _():
        acc_ref[...] = jnp.zeros_like(acc_ref)

    acc_ref[...] += jnp.dot(a1_ref[...], g_ref[...],
                            preferred_element_type=jnp.float32)

    @pl.when(k == pl.num_programs(1) - 1)
    def _():
        mean_ref[...] = (acc_ref[...] + b2_ref[...]).astype(mean_ref.dtype)


# ----------------------------------------------------------------------------
# wrapper
# ----------------------------------------------------------------------------
def vgcn_forward_pallas(a_w, a_1, x, w1, b1, w2, b2):
    """a_w / a_1: [N,N] dense normalized adjacencies (with / without edge weights).
    x: [N, x_dim]; w1: [h_dim, x_dim]; b1: [h_dim]; w2: [z_dim, h_dim]; b2: [z_dim]."""
    n, x_dim = x.shape
    h_dim = w1.shape[0]
    z_dim = w2.shape[0]

    tm, tk = _tiles(n)
    n_pad = _round_up(n, max(tm, tk))   # divisible by both tm and tk
    x_pad = _round_up(x_dim, 128)       # lane-dense contraction dim
    h_pad = _round_up(h_dim, 128)       # lane-dense hidden dim
    z_pad = _round_up(z_dim, 128)       # lane-dense output dim -> unmasked vst

    f32, bf16 = jnp.float32, jnp.bfloat16

    # bf16 operands (halves HBM/VMEM traffic of the dominant N x N adjacencies,
    # native MXU path); zero padding keeps the math exact for the real rows.
    a_w_p = _pad2(a_w.astype(f32), n_pad, n_pad).astype(bf16)
    a_1_p = _pad2(a_1.astype(f32), n_pad, n_pad).astype(bf16)
    x_p   = _pad2(x.astype(f32), n_pad, x_pad).astype(bf16)
    w1t_p = _pad2(jnp.transpose(w1).astype(f32), x_pad, h_pad).astype(bf16)
    w2t_p = _pad2(jnp.transpose(w2).astype(f32), h_pad, z_pad).astype(bf16)
    b1_p  = _pad2(b1.reshape(1, -1).astype(f32), 1, h_pad)
    b2_p  = _pad2(b2.reshape(1, -1).astype(f32), 1, z_pad)

    grid = (n_pad // tm, n_pad // tk)
    sem = ("parallel", "arbitrary")   # rows shard across TCs; k is a reduction

    # ---- stage 1: G = relu((Â_w @ X) @ W1ᵀ + b1) @ W2ᵀ -----------------------
    g = pl.pallas_call(
        _gcn1_fused_kernel,
        out_shape=jax.ShapeDtypeStruct((n_pad, z_pad), bf16),
        grid=grid,
        in_specs=[
            pl.BlockSpec((tm, tk), lambda i, k: (i, k)),       # Â_w block (bf16)
            pl.BlockSpec((tk, x_pad), lambda i, k: (k, 0)),    # X block (bf16)
            pl.BlockSpec((x_pad, h_pad), lambda i, k: (0, 0)), # W1ᵀ resident
            pl.BlockSpec((1, h_pad), lambda i, k: (0, 0)),     # b1 resident (f32)
            pl.BlockSpec((h_pad, z_pad), lambda i, k: (0, 0)), # W2ᵀ resident
        ],
        out_specs=pl.BlockSpec((tm, z_pad), lambda i, k: (i, 0)),
        scratch_shapes=[pltpu.VMEM((tm, x_pad), f32)],         # AX accumulator
        compiler_params=pltpu.CompilerParams(
            dimension_semantics=sem,
            vmem_limit_bytes=_vmem_limit(
                2 * (2 * tm * tk + 2 * tk * x_pad + 2 * x_pad * h_pad
                     + 4 * h_pad + 2 * h_pad * z_pad + 2 * tm * z_pad)
                + 4 * tm * x_pad)),
    )(a_w_p, x_p, w1t_p, b1_p, w2t_p)

    # ---- stage 2: mean = Â_1 @ G + b2 ---------------------------------------
    mean_pad = pl.pallas_call(
        _gcn2_kernel,
        out_shape=jax.ShapeDtypeStruct((n_pad, z_pad), f32),
        grid=grid,
        in_specs=[
            pl.BlockSpec((tm, tk), lambda i, k: (i, k)),       # Â_1 block (bf16)
            pl.BlockSpec((tk, z_pad), lambda i, k: (k, 0)),    # G block (bf16)
            pl.BlockSpec((1, z_pad), lambda i, k: (0, 0)),     # b2 resident (f32)
        ],
        out_specs=pl.BlockSpec((tm, z_pad), lambda i, k: (i, 0)),
        scratch_shapes=[pltpu.VMEM((tm, z_pad), f32)],         # mean accumulator
        compiler_params=pltpu.CompilerParams(
            dimension_semantics=sem,
            vmem_limit_bytes=_vmem_limit(
                2 * (2 * tm * tk + 2 * tk * z_pad + 4 * z_pad + 4 * tm * z_pad)
                + 4 * tm * z_pad)),
    )(a_1_p, g, b2_p)

    mean = mean_pad[:n, :z_dim]
    # the module's `if self.eval:` is always truthy -> (mean, zeros, zeros)
    return mean, jnp.zeros((1,), f32), jnp.zeros((1,), f32)


# ----------------------------------------------------------------------------
# Plain-JAX glue: dense normalized adjacency (GCN norm, add_self_loops=True)
# ----------------------------------------------------------------------------
def normalized_adjacency(edge_index, edge_weight, num_nodes):
    src = edge_index[0]
    dst = edge_index[1]
    if edge_weight is None:
        edge_weight = jnp.ones((edge_index.shape[1],), jnp.float32)
    loop = jnp.arange(num_nodes, dtype=edge_index.dtype)
    src = jnp.concatenate([src, loop])
    dst = jnp.concatenate([dst, loop])
    w = jnp.concatenate([edge_weight.astype(jnp.float32),
                         jnp.ones((num_nodes,), jnp.float32)])
    # A[i, j] = weight of edge j -> i  (aggregation at target node i)
    a = jnp.zeros((num_nodes, num_nodes), jnp.float32).at[dst, src].add(w)
    deg = jnp.sum(a, axis=1)
    dinv = jnp.where(deg > 0, lax.rsqrt(deg), 0.0)
    return dinv[:, None] * a * dinv[None, :]


def glorot(key, out_dim, in_dim):
    limit = jnp.sqrt(6.0 / (in_dim + out_dim))
    return jax.random.uniform(key, (out_dim, in_dim), jnp.float32, -limit, limit)


if __name__ == "__main__":
    # Small shapes consistent with the module: N nodes, x_dim -> h_dim -> z_dim
    N, X_DIM, H_DIM, Z_DIM = 16, 8, 32, 16

    key = jax.random.PRNGKey(0)
    k_x, k_ew, k_w1, k_w2 = jax.random.split(key, 4)

    # node features
    x = jax.random.normal(k_x, (N, X_DIM), jnp.float32)

    # deterministic ring graph (both directions) -> edge_index [2, 2N]
    idx = jnp.arange(N, dtype=jnp.int32)
    src = jnp.concatenate([idx, (idx + 1) % N])
    dst = jnp.concatenate([(idx + 1) % N, idx])
    edge_index = jnp.stack([src, dst], axis=0)                  # [2, 32]
    edge_weight = jax.random.uniform(k_ew, (edge_index.shape[1],), jnp.float32,
                                     0.5, 1.5)

    # GCNConv parameters (c1: x_dim->h_dim, mean: h_dim->z_dim)
    w1 = glorot(k_w1, H_DIM, X_DIM)
    b1 = jnp.zeros((H_DIM,), jnp.float32)
    w2 = glorot(k_w2, Z_DIM, H_DIM)
    b2 = jnp.zeros((Z_DIM,), jnp.float32)

    # dense normalized adjacencies (with edge weights for c1, ones for mean)
    a_w = normalized_adjacency(edge_index, edge_weight, N)
    a_1 = normalized_adjacency(edge_index, None, N)

    mean, z1, z2 = vgcn_forward_pallas(a_w, a_1, x, w1, b1, w2, b2)
    jax.block_until_ready(mean)

    # bf16-aware reference (mirrors the kernel's bf16 operand rounding and
    # its (Â_w @ X) @ W1ᵀ association order)
    def bfr(v):
        return v.astype(jnp.bfloat16).astype(jnp.float32)

    ax_r = jnp.dot(bfr(a_w), bfr(x))
    h_r = jnp.maximum(jnp.dot(bfr(ax_r), bfr(w1).T) + b1[None, :], 0.0)
    g_r = bfr(jnp.dot(bfr(h_r), bfr(w2).T))
    mean_r = jnp.dot(bfr(a_1), g_r) + b2[None, :]

    assert mean.shape == (N, Z_DIM)
    assert jnp.allclose(mean, mean_r, atol=1e-2, rtol=1e-2)

    # sanity vs the pure-f32 reference (loose tolerance for bf16 operands)
    h_f = jnp.maximum(a_w @ (x @ w1.T) + b1[None, :], 0.0)
    mean_f = a_1 @ (h_f @ w2.T) + b2[None, :]
    assert jnp.allclose(mean, mean_f, atol=5e-2, rtol=5e-2)
    assert z1.shape == (1,) and z2.shape == (1,)

    print("KERNEL_OK")
</pallas_src>

<mosaic_0001>
module attributes {stable_mosaic.version = 11 : i64} {
  func.func @_gcn1_fused_kernel(%arg0: i32, %arg1: i32, %arg2: memref<8x16xbf16, #tpu.memory_space<vmem>>, %arg3: memref<16x128xbf16, #tpu.memory_space<vmem>>, %arg4: memref<128x128xbf16, #tpu.memory_space<vmem>>, %arg5: memref<1x128xf32, #tpu.memory_space<vmem>>, %arg6: memref<128x128xbf16, #tpu.memory_space<vmem>>, %arg7: memref<8x128xbf16, #tpu.memory_space<vmem>>, %arg8: memref<8x128xf32, #tpu.memory_space<vmem>>) attributes {dimension_semantics = [#tpu.dimension_semantics<parallel>, #tpu.dimension_semantics<arbitrary>], iteration_bounds = array<i64: 2, 1>, scalar_prefetch = 0 : i64, scratch_operands = 1 : i64, tpu.core_type = #tpu.core_type<tc>, window_params = [{transform_indices = @transform_0, window_bounds = array<i64: 8, 16>}, {transform_indices = @transform_1, window_bounds = array<i64: 16, 128>}, {pipeline_mode = #tpu.pipeline_mode<synchronous>, transform_indices = @transform_2, window_bounds = array<i64: 128, 128>}, {pipeline_mode = #tpu.pipeline_mode<synchronous>, transform_indices = @transform_3, window_bounds = array<i64: 1, 128>}, {pipeline_mode = #tpu.pipeline_mode<synchronous>, transform_indices = @transform_4, window_bounds = array<i64: 128, 128>}, {transform_indices = @transform_5, window_bounds = array<i64: 8, 128>}]} {
    %c0_i32 = arith.constant 0 : i32
    %0 = arith.cmpi eq, %arg1, %c0_i32 : i32
    %1 = arith.extui %0 : i1 to i32
    %c0_i32_0 = arith.constant 0 : i32
    %2 = arith.cmpi ne, %1, %c0_i32_0 : i32
    scf.if %2 {
      %cst_10 = arith.constant 0.000000e+00 : f32
      %12 = vector.broadcast %cst_10 : f32 to vector<8x128xf32>
      %c0_11 = arith.constant 0 : index
      %c0_12 = arith.constant 0 : index
      %13 = vector.load %arg8[%c0_11, %c0_12] : memref<8x128xf32, #tpu.memory_space<vmem>>, vector<8x128xf32>
      tpu.vector_store %arg8[%c0_11, %c0_12], %12 {strides = array<i32>} : memref<8x128xf32, #tpu.memory_space<vmem>>, vector<8x128xf32>,
    } else {
    }
    %c0 = arith.constant 0 : index
    %c0_1 = arith.constant 0 : index
    %3 = vector.load %arg8[%c0, %c0_1] : memref<8x128xf32, #tpu.memory_space<vmem>>, vector<8x128xf32>
    %c0_2 = arith.constant 0 : index
    %c0_3 = arith.constant 0 : index
    %4 = vector.load %arg2[%c0_2, %c0_3] : memref<8x16xbf16, #tpu.memory_space<vmem>>, vector<8x16xbf16>
    %c0_4 = arith.constant 0 : index
    %c0_5 = arith.constant 0 : index
    %5 = vector.load %arg3[%c0_4, %c0_5] : memref<16x128xbf16, #tpu.memory_space<vmem>>, vector<16x128xbf16>
    %cst = arith.constant dense<0.000000e+00> : vector<8x128xf32>
    %6 = tpu.matmul %4, %5, %cst {dimension_numbers = #tpu.dot_dimension_numbers<[1], [0], [0], [1], [0, 0, 1, 1], [], []>} : vector<8x16xbf16>, vector<16x128xbf16>, vector<8x128xf32> -> vector<8x128xf32>
    %7 = arith.addf %3, %6 : vector<8x128xf32>
    %c0_6 = arith.constant 0 : index
    %c0_7 = arith.constant 0 : index
    %8 = vector.load %arg8[%c0_6, %c0_7] : memref<8x128xf32, #tpu.memory_space<vmem>>, vector<8x128xf32>
    tpu.vector_store %arg8[%c0_6, %c0_7], %7 {strides = array<i32>} : memref<8x128xf32, #tpu.memory_space<vmem>>, vector<8x128xf32>,
    %c0_i32_8 = arith.constant 0 : i32
    %9 = arith.cmpi eq, %arg1, %c0_i32_8 : i32
    %10 = arith.extui %9 : i1 to i32
    %c0_i32_9 = arith.constant 0 : i32
    %11 = arith.cmpi ne, %10, %c0_i32_9 : i32
    scf.if %11 {
      %c0_10 = arith.constant 0 : index
      %c0_11 = arith.constant 0 : index
      %12 = vector.load %arg8[%c0_10, %c0_11] : memref<8x128xf32, #tpu.memory_space<vmem>>, vector<8x128xf32>
      %13 = arith.truncf %12 : vector<8x128xf32> to vector<8x128xbf16>
      %c0_12 = arith.constant 0 : index
      %c0_13 = arith.constant 0 : index
      %14 = vector.load %arg4[%c0_12, %c0_13] : memref<128x128xbf16, #tpu.memory_space<vmem>>, vector<128x128xbf16>
      %cst_14 = arith.constant dense<0.000000e+00> : vector<8x128xf32>
      %15 = tpu.matmul %13, %14, %cst_14 {dimension_numbers = #tpu.dot_dimension_numbers<[1], [0], [0], [1], [0, 0, 1, 1], [], []>} : vector<8x128xbf16>, vector<128x128xbf16>, vector<8x128xf32> -> vector<8x128xf32>
      %c0_15 = arith.constant 0 : index
      %c0_16 = arith.constant 0 : index
      %16 = vector.load %arg5[%c0_15, %c0_16] : memref<1x128xf32, #tpu.memory_space<vmem>>, vector<1x128xf32>
      %17 = vector.broadcast %16 : vector<1x128xf32> to vector<8x128xf32>
      %18 = arith.addf %15, %17 : vector<8x128xf32>
      %cst_17 = arith.constant 0.000000e+00 : f32
      %19 = vector.broadcast %cst_17 : f32 to vector<8x128xf32>
      %20 = arith.maximumf %18, %19 : vector<8x128xf32>
      %21 = arith.truncf %20 : vector<8x128xf32> to vector<8x128xbf16>
      %c0_18 = arith.constant 0 : index
      %c0_19 = arith.constant 0 : index
      %22 = vector.load %arg6[%c0_18, %c0_19] : memref<128x128xbf16, #tpu.memory_space<vmem>>, vector<128x128xbf16>
      %cst_20 = arith.constant dense<0.000000e+00> : vector<8x128xf32>
      %23 = tpu.matmul %21, %22, %cst_20 {dimension_numbers = #tpu.dot_dimension_numbers<[1], [0], [0], [1], [0, 0, 1, 1], [], []>} : vector<8x128xbf16>, vector<128x128xbf16>, vector<8x128xf32> -> vector<8x128xf32>
      %24 = arith.truncf %23 : vector<8x128xf32> to vector<8x128xbf16>
      %c0_21 = arith.constant 0 : index
      %c0_22 = arith.constant 0 : index
      %25 = vector.load %arg7[%c0_21, %c0_22] : memref<8x128xbf16, #tpu.memory_space<vmem>>, vector<8x128xbf16>
      tpu.vector_store %arg7[%c0_21, %c0_22], %24 {strides = array<i32>} : memref<8x128xbf16, #tpu.memory_space<vmem>>, vector<8x128xbf16>,
    } else {
    }
    return
  }
  func.func @transform_0(%arg0: i32, %arg1: i32) -> (i32, i32) {
    %c0_i32 = arith.constant 0 : i32
    return %arg0, %arg1 : i32, i32
  }
  func.func @transform_1(%arg0: i32, %arg1: i32) -> (i32, i32) {
    %c0_i32 = arith.constant 0 : i32
    %c0_i32_0 = arith.constant 0 : i32
    return %arg1, %c0_i32 : i32, i32
  }
  func.func @transform_2(%arg0: i32, %arg1: i32) -> (i32, i32) {
    %c0_i32 = arith.constant 0 : i32
    %c0_i32_0 = arith.constant 0 : i32
    %c0_i32_1 = arith.constant 0 : i32
    return %c0_i32, %c0_i32_0 : i32, i32
  }
  func.func @transform_3(%arg0: i32, %arg1: i32) -> (i32, i32) {
    %c0_i32 = arith.constant 0 : i32
    %c0_i32_0 = arith.constant 0 : i32
    %c0_i32_1 = arith.constant 0 : i32
    return %c0_i32, %c0_i32_0 : i32, i32
  }
  func.func @transform_4(%arg0: i32, %arg1: i32) -> (i32, i32) {
    %c0_i32 = arith.constant 0 : i32
    %c0_i32_0 = arith.constant 0 : i32
    %c0_i32_1 = arith.constant 0 : i32
    return %c0_i32, %c0_i32_0 : i32, i32
  }
  func.func @transform_5(%arg0: i32, %arg1: i32) -> (i32, i32) {
    %c0_i32 = arith.constant 0 : i32
    %c0_i32_0 = arith.constant 0 : i32
    return %arg0, %c0_i32 : i32, i32
  }
}

</mosaic_0001>

<bundles_post_ra>
// kernel: tpu_custom_call.1
= control target key start
LH: loop header
LB: loop body
LE: loop exit
PB: predicated region body
PF: predicated region fallthrough
CT: control target
= control target key end

     0   :  { %10 = vsyncpa [#allocation4], 0  ;;  %s1472_s0 = inlined_call_operand.hbm [shape: bf16[16,16], index: 0, kind: input, shape index: {}]   ;;  %s1473_s1 = inlined_call_operand.hbm [shape: bf16[16,128], index: 1, kind: input, shape index: {}]   ;;  %s1474_s2 = inlined_call_operand.hbm [shape: bf16[128,128], index: 2, kind: input, shape index: {}]   ;;  %s1475_s3 = inlined_call_operand.vmem [shape: f32[1,128], index: 3, kind: input, shape index: {}]   ;;  %s1476_s4 = inlined_call_operand.hbm [shape: bf16[128,128], index: 4, kind: input, shape index: {}]   ;;  %s1477_s5 = inlined_call_operand.hbm [shape: bf16[16,128], index: 5, kind: output, shape index: {}]  }
   0x1   :  { %12 = vsyncpa [#allocation4 + $0x1], 0 }
   0x2   :  { %13 = vsyncpa [#allocation7], 0 }
   0x3   :  { %14 = vsyncpa [#allocation10], 0 }
   0x4   :  { %15 = vsyncpa [#allocation5], 0 }
   0x5   :  { %17 = vsyncpa [#allocation5 + $0x1], 0  ;;  %s1181_s18 = smov 0   ;;  %s1183_s19 = smov 0  }
   0x6   :  { %s1185_s20 = smov 0   ;;  %s1187_s21 = smov 0  }
   0x7   :  { %s1189_s22 = smov 0   ;;  %s1191_s23 = smov 0  }
   0x8 LB: > { %1484 = sst [smem:[#allocation16_spill]] %s1120_s18  ;;  %s718_s24 = sadd.s32 4294967295, %s1140_s23   ;;  %s1140_s23 = sphi %s1191_s23, %s23_s23   ;;  %s1136_s22 = sphi %s1189_s22, %s1507_s22   ;;  %s1132_s21 = sphi %s1187_s21, %s1506_s21   ;;  %s1128_s20 = sphi %s1185_s20, %s1505_s20   ;;  %s1124_s19 = sphi %s1183_s19, %s1504_s19   ;;  %s1120_s18 = sphi %s1181_s18, %s1503_s18  }
   0x9   : > { %s719_s25 = sadd.s32 4294967294, %s1140_s23   ;;  %p57_p0 = scmp.ne.s32.totalorder %s1124_s19, %s1120_s18 }
   0xa   : > { %p1215_p1 = scmp.eq.s32.totalorder %s718_s24, 0  ;;  %p1219_p2 = scmp.eq.s32.totalorder %s718_s24, 1 }
   0xb   : > { %p176_p3 = scmp.eq.s32.totalorder %s719_s25, 1  ;;  %p720_p5 = scmp.ge.s32.totalorder %s1140_s23, 1 }
   0xc   : > { %s1485_s26 = scalar_select %p1215_p1, 1, 0 }
   0xd   : > { %s1486_s27 = scalar_select %p1219_p2, 1, 0 }
   0xe   : > { %p1225_p4 = por %p1215_p1, %p57_p0  ;;  %p1230_p6 = por %p176_p3, %p57_p0 }
   0xf   : > { %p183_p7 = scmp.lt.s32.totalorder %s1140_s23, 3  ;;  %s1142_s6 = smov [#allocation6]  }
  0x10   : > { %s1487_s28 = scalar_select %p1225_p4, 1, 0 }
  0x11   : > { %s1488_s29 = scalar_select %p1230_p6, 1, 0 }
  0x12   : > { %p1235_p8 = pnand %p720_p5, %p183_p7  ;;  %s198_s7 = sshll.u32 %s1142_s6, 4  ;;  %s1239_s7 = int_to_ptr.vmem [resolvable:$true] %s198_s7 }
  0x13   : > { %1489 = sst [smem:[#allocation17_spill]] %s1488_s29  ;;  %s1143_s9 = smov [#allocation8]  }
  0x14   : > { %s1490_s30 = scalar_select %p1235_p8, 1, 0 }
  0x15   : > { %p838_p9 = pneg %p1235_p8  ;;  %s211_s10 = sshll.u32 %s1143_s9, 4  ;;  %s1250_s10 = int_to_ptr.vmem [resolvable:$true] %s211_s10 }
  0x16   : > { %s1144_s11 = smov [#allocation9]   ;;  %s936_s15 = scalar_lea.hbm %s1473_s1, 128 }
  0x17   : > { %p1246_p11 = pnand %p838_p9, %p1215_p1  ;;  %s1252_s12 = sshll.u32 %s1144_s11, 4  ;;  %s228_s12 = int_to_ptr.vmem [resolvable:$true] %s1252_s12 }
  0x18   : > { %p937_p12 = scmp.ne.s32.totalorder %s1473_s1, %s936_s15  ;;  %p943_p5 = scmp.lt.u32.totalorder %s936_s15, %s1473_s1 }
  0x19   : > { %p1262_p13 = pneg %p1246_p11 }
  0x1b   : > { %p939_p0 = pnand %p1262_p13, %p937_p12 }
  0x1d   : > { %p940_p3 = pneg %p939_p0 }
  0x1f   : > { %p945_p7 = pnand %p943_p5, %p940_p3 }
  0x21   : > { %948 = shalt.err (!%p945_p7)
}
  0x22   : > { %s949_s9 = scalar_lea.vmem %s1239_s7, 128  ;;  %p957_p1 = scmp.lt.s32.totalorder %s1239_s7, %s1239_s7 }
  0x23   : > { %p950_p9 = scmp.ne.s32.totalorder %s1239_s7, %s949_s9  ;;  %p958_p4 = scmp.lt.s32.totalorder %s949_s9, %s949_s9 }
  0x25   : > { %p952_p10 = pnand %p950_p9, %p1262_p13  ;;  %p959_p12 = por %p958_p4, %p957_p1 }
  0x27   : > { %p953_p6 = pneg %p952_p10 }
  0x29   : > { %p960_p0 = pnand %p959_p12, %p953_p6 }
  0x2b   : > { %963 = shalt.err (!%p960_p0)
}
  0x2c   : > { %s1145_s11 = smov 64   ;;  %s1146_s13 = smov 4  }
  0x2d   : > { %841 = dma.hbm_to_vmem [thread:$0]  (!%p1246_p11), %s1473_s1, 128, %s1239_s7, [#allocation7], %s1145_s11, %s1145_s11, %s1146_s13  }
  0x2e   : > { %s964_s25 = scalar_lea.hbm %s1474_s2, 1024 }
  0x2f   : > { %p965_p1 = scmp.ne.s32.totalorder %s1474_s2, %s964_s25  ;;  %p971_p10 = scmp.lt.u32.totalorder %s964_s25, %s1474_s2 }
  0x31   : > { %p967_p4 = pnand %p965_p1, %p1262_p13 }
  0x33   : > { %p968_p6 = pneg %p967_p4 }
  0x35   : > { %p973_p3 = pnand %p971_p10, %p968_p6 }
  0x37   : > { %976 = shalt.err (!%p973_p3)
}
  0x38   : > { %s977_s7 = scalar_lea.vmem %s1250_s10, 1024  ;;  %p985_p12 = scmp.lt.s32.totalorder %s1250_s10, %s1250_s10 }
  0x39   : > { %p978_p5 = scmp.ne.s32.totalorder %s1250_s10, %s977_s7  ;;  %p986_p0 = scmp.lt.s32.totalorder %s977_s7, %s977_s7 }
  0x3b   : > { %p980_p7 = pnand %p978_p5, %p1262_p13  ;;  %p987_p1 = por %p986_p0, %p985_p12 }
  0x3d   : > { %p981_p9 = pneg %p980_p7 }
  0x3f   : > { %p988_p4 = pnand %p987_p1, %p981_p9 }
  0x41   : > { %991 = shalt.err (!%p988_p4)
}
  0x42   : > { %844 = dma.hbm_to_vmem [thread:$0]  (!%p1246_p11), %s1474_s2, 1024, %s1250_s10, [#allocation7], %s1145_s11, %s1145_s11, %s1146_s13  }
  0x43   : > { %s992_s16 = scalar_lea.hbm %s1476_s4, 1024 }
  0x44   : > { %p993_p6 = scmp.ne.s32.totalorder %s1476_s4, %s992_s16  ;;  %p999_p5 = scmp.lt.u32.totalorder %s992_s16, %s1476_s4 }
  0x46   : > { %p995_p10 = pnand %p993_p6, %p1262_p13 }
  0x48   : > { %p996_p3 = pneg %p995_p10 }
  0x4a   : > { %p1001_p7 = pnand %p999_p5, %p996_p3 }
  0x4c   : > { %1004 = shalt.err (!%p1001_p7)
}
  0x4d   : > { %s1005_s7 = scalar_lea.vmem %s228_s12, 1024  ;;  %p1013_p1 = scmp.lt.s32.totalorder %s228_s12, %s228_s12 }
  0x4e   : > { %p1006_p9 = scmp.ne.s32.totalorder %s228_s12, %s1005_s7  ;;  %p1014_p4 = scmp.lt.s32.totalorder %s1005_s7, %s1005_s7 }
  0x50   : > { %p1008_p12 = pnand %p1006_p9, %p1262_p13  ;;  %p1015_p8 = por %p1014_p4, %p1013_p1 }
  0x52   : > { %p1009_p0 = pneg %p1008_p12 }
  0x54   : > { %p1016_p2 = pnand %p1015_p8, %p1009_p0 }
  0x56   : > { %1019 = shalt.err (!%p1016_p2)
}
  0x57   : > { %847 = dma.hbm_to_vmem [thread:$0]  (!%p1246_p11), %s1476_s4, 1024, %s228_s12, [#allocation10], %s1145_s11, %s1145_s11, %s1146_s13  }
  0x58   : > { %s44_s24 = sadd.s32 1, %s1128_s20  ;;  %s35_s8 = sadd.s32 1, %s1136_s22 }
  0x59   : > { %p51_p2 = scmp.ne.s32.totalorder %s1128_s20, %s1124_s19  ;;  %p37_p8 = scmp.ge.s32.totalorder %s35_s8, 2 }
  0x5a   : > { %p52_p13 = scmp.eq.s32.totalorder %s1140_s23, 0  ;;  %p1493_p6 = scmp.ne.s32.totalorder %s1486_s27, 0 }
  0x5b   : > { %p859_p3 = scmp.lt.s32.totalorder %s1140_s23, 2  ;;  %s1509_s8 = smov (%p37_p8, %s35_s8), 0 }
  0x5c   : > { %p1341_p10 = por %p1493_p6, %p51_p2  ;;  %p53_p5 = por %p52_p13, %p51_p2 }
  0x5d   : > { %s241_s14 = sand.u32 1, %s1128_s20   ;;  %s39_s15 = ssub.s32 %s1136_s22, %s1509_s8 }
  0x5e   : > { %p42_p7 = scmp.eq.s32.totalorder %s39_s15, 0  ;;  %s725_s12 = sshll.u32 %s241_s14, 2 }
  0x5f   : > { %s726_s11 = sshll.u32 %s1136_s22, 6  ;;  %s245_s25 = scalar_lea.vmem [#allocation3], %s725_s12 }
  0x60   : > { %s1353_s13 = scalar_select %p42_p7, %s1128_s20, %s44_s24  }
  0x61   : > { %s1358_s27 = scalar_lea.hbm %s1472_s0, %s726_s11  ;;  %s253_s6 = sshll.u32 %s245_s25, 4  ;;  %s1360_s6 = int_to_ptr.vmem [resolvable:$true] %s253_s6 }
  0x62   : > { %p1364_p11 = pnand %p859_p3, %p53_p5  ;;  %s242_s7 = scalar_lea.sflag [#allocation4], %s241_s14 }
  0x63   : > { %s1020_s10 = scalar_lea.hbm %s1358_s27, 64  ;;  %s1025_s15 = scalar_lea.hbm %s1472_s0, 128 }
  0x64   : > { %p1021_p9 = scmp.ne.s32.totalorder %s1358_s27, %s1020_s10  ;;  %p1022_p12 = pneg %p1364_p11 }
  0x65   : > { %p1026_p4 = scmp.lt.u32.totalorder %s1358_s27, %s1472_s0  ;;  %p1027_p2 = scmp.lt.u32.totalorder %s1025_s15, %s1020_s10 }
  0x66   : > { %p1023_p0 = pnand %p1022_p12, %p1021_p9  ;;  %p1029_p13 = scmp.lt.u32.totalorder %s1020_s10, %s1358_s27 }
  0x67   : > { %p1028_p8 = por %p1027_p2, %p1026_p4 }
  0x68   : > { %p1024_p1 = pneg %p1023_p0 }
  0x69   : > { %p1030_p6 = por %p1029_p13, %p1028_p8 }
  0x6b   : > { %p1031_p3 = pnand %p1030_p6, %p1024_p1 }
  0x6d   : > { %1034 = shalt.err (!%p1031_p3)
}
  0x6e   : > { %s1035_s14 = scalar_lea.vmem %s1360_s6, 64  ;;  %s1147_s16 = smov [#allocation3]  }
  0x6f   : > { %p1036_p5 = scmp.ne.s32.totalorder %s1360_s6, %s1035_s14  ;;  %s1040_s17 = sshll.u32 %s1147_s16, 4  ;;  %s1041_s17 = int_to_ptr.vmem [resolvable:$false] %s1040_s17 }
  0x70   : > { %s1042_s25 = scalar_lea.vmem %s1041_s17, 128  ;;  %p1043_p0 = scmp.lt.s32.totalorder %s1360_s6, %s1041_s17 }
  0x71   : > { %p1038_p7 = pnand %p1036_p5, %p1022_p12  ;;  %p1044_p4 = scmp.lt.s32.totalorder %s1042_s25, %s1035_s14 }
  0x73   : > { %p1039_p9 = pneg %p1038_p7  ;;  %p1045_p2 = por %p1044_p4, %p1043_p0 }
  0x75   : > { %p1046_p8 = pnand %p1045_p2, %p1039_p9 }
  0x77   : > { %1049 = shalt.err (!%p1046_p8)
}
  0x78   : > { %851 = dma.hbm_to_vmem [thread:$0]  (!%p1364_p11), %s1358_s27, 64, %s1360_s6, %s242_s7  }
  0x79   : > { %p1496_p1 = scmp.ne.s32.totalorder %s1490_s30, 0 }
  0x7a   : > { %s1396_s10 = sand.u32 (!%p1496_p1), 1, %s1124_s19   ;;  %p1497_p12 = scmp.ne.s32.totalorder (!%p1496_p1), %s1487_s28, 0 }
  0x7b   : > { %262 = sbr.rel (%p1496_p1) target bundleno = 802 (0x322), region = 40  ;;  %s728_s18 = sshll.u32 (!%p1496_p1), %s1396_s10, 2 }
  0x7c   : > { %s265_s24 = scalar_lea.sflag (!%p1496_p1), [#allocation4], %s1396_s10  ;;  %s268_s15 = scalar_lea.vmem (!%p1496_p1), [#allocation3], %s728_s18 }
  0x82   : > { %1103 = dma.done.wait (%p1497_p12), %s265_s24, 64  }
  0x83   : > { %1105 = vsyncadd (%p1497_p12), %s265_s24, 4294967232  ;;  %p1498_p11 = scmp.ne.s32.totalorder %s1485_s26, 0 }
  0x85   : > { %1107 = dma.done.wait (%p1498_p11), [#allocation7], 1152  }
  0x86   : > { %1109 = vsyncadd (%p1498_p11), [#allocation7], 4294966144 }
  0x87   : > { %1111 = dma.done.wait (%p1498_p11), [#allocation10], 1024  }
  0x88   : > { %1113 = vsyncadd (%p1498_p11), [#allocation10], 4294966272  ;;  %v1148_v0 = vmov 0.0   ;;  %vm1149_vm0 = vmmov 0   ;;  %v919_v1 = vld [vmem:[#allocation6] sm:$0xff]   ;;  %vm324_vm1 = vcmask 130048  }
  0x89   : > { %776 = vmatprep.subr.bf16.mxu0 %v1148_v0  ;;  %778 = vmatprep.mubr.msk.bf16.mxu0 %vm1149_vm0, %v1148_v0  ;;  %v315_v2 = vld [vmem:[%s268_s15] sm:$0xf]  ;;  %v920_v3 = vld [vmem:[#allocation8] sm:$0xff]   ;;  %v921_v4 = vld [vmem:[#allocation8 + $0x8] sm:$0xff]   ;;  %s753_s30 = sshll.u32 %s1132_s21, 6  ;;  %s306_s27 = scalar_lea.vmem [#allocation11], %s728_s18 }
  0x8a   : > { %782 = vmatprep.subr.bf16.mxu1 %v1148_v0  ;;  %798 = vmatprep.mubr.msk.bf16.mxu1 %vm1149_vm0, %v1148_v0  ;;  %v922_v5 = vld [vmem:[#allocation8 + $0x10] sm:$0xff]   ;;  %v923_v6 = vld [vmem:[#allocation8 + $0x18] sm:$0xff]   ;;  %v924_v7 = vld [vmem:[#allocation8 + $0x20] sm:$0xff]   ;;  %s608_s6 = sshll.u32 %s306_s27, 4  ;;  %s1423_s12 = scalar_lea.hbm %s1477_s5, %s753_s30  ;;  %s1425_s6 = int_to_ptr.vmem [resolvable:$true] %s608_s6 }
  0x8b   : > { %777 = vmatpush3.bf16.msra.mxu0 %v919_v1  ;;  %783 = vmatpush3.bf16.msra.mxu1 %v920_v3  ;;  %v925_v8 = vld [vmem:[#allocation8 + $0x28] sm:$0xff]   ;;  %v926_v9 = vld [vmem:[#allocation8 + $0x30] sm:$0xff]   ;;  %v927_v10 = vld [vmem:[#allocation8 + $0x38] sm:$0xff]   ;;  %s595_s21 = scalar_lea.sflag [#allocation5], %s1396_s10  ;;  %s1050_s11 = scalar_lea.vmem %s1425_s6, 64 }
  0x8c   : > { %802 = vmatprep.subr.bf16.mxu0 %v1148_v0  ;;  %784 = vmatprep.subr.bf16.mxu1 %v1148_v0  ;;  %v928_v11 = vld [vmem:[#allocation9] sm:$0xff]   ;;  %v929_v12 = vld [vmem:[#allocation9 + $0x8] sm:$0xff]   ;;  %v930_v13 = vld [vmem:[#allocation9 + $0x10] sm:$0xff]   ;;  %p1051_p13 = scmp.ne.s32.totalorder %s1425_s6, %s1050_s11  ;;  %s1150_s14 = smov [#allocation11]  }
  0x8d   : > { %v931_v14 = vld [vmem:[#allocation9 + $0x18] sm:$0xff]   ;;  %v932_v15 = vld [vmem:[#allocation9 + $0x20] sm:$0xff]   ;;  %v933_v16 = vld [vmem:[#allocation9 + $0x28] sm:$0xff]   ;;  %s1054_s16 = sshll.u32 %s1150_s14, 4  ;;  %s1055_s16 = int_to_ptr.vmem [resolvable:$false] %s1054_s16 }
  0x8e   : > { %779 = vmatmul.mubr.msk.bf16.vlgmr.msra.gmra.mrb[0].mxu0 %vm324_vm1, %v315_v2  ;;  %v934_v22 = vld [vmem:[#allocation9 + $0x30] sm:$0xff]   ;;  %v935_v23 = vld [vmem:[#allocation9 + $0x38] sm:$0xff]   ;;  %p1052_p6 = pnand %p1051_p13, %p1341_p10  ;;  %s1056_s17 = scalar_lea.vmem %s1055_s16, 128 }
  0x8f   : > { %818 = vmatprep.mubr.msk.bf16.mxu0 %vm1149_vm0, %v1148_v0  ;;  %785 = vmatpush3.bf16.msra.mxu1 %v921_v4  ;;  %v735_v24 = vld [vmem:[%s1475_s3] ss:$0 sm:$0xff]  ;;  %p1057_p5 = scmp.lt.s32.totalorder %s1425_s6, %s1055_s16  ;;  %p1058_p7 = scmp.lt.s32.totalorder %s1056_s17, %s1050_s11 }
  0x90   : > { %786 = vmatprep.subr.bf16.mxu1 %v1148_v0  ;;  %803 = vmatpush3.bf16.msra.mxu0 %v928_v11  ;;  %p1053_p3 = pneg %p1052_p6 }
  0x91   : > { %804 = vmatprep.subr.bf16.mxu0 %v1148_v0  ;;  %p1059_p9 = por %p1058_p7, %p1057_p5 }
  0x93   : > { %787 = vmatpush3.bf16.msra.mxu1 %v922_v5  ;;  %p1060_p0 = pnand %p1059_p9, %p1053_p3 }
  0x94   : > { %788 = vmatprep.subr.bf16.mxu1 %v1148_v0  ;;  %805 = vmatpush3.bf16.msra.mxu0 %v929_v12 }
  0x95   : > { %806 = vmatprep.subr.bf16.mxu0 %v1148_v0 }
  0x97   : > { %789 = vmatpush3.bf16.msra.mxu1 %v923_v6 }
  0x98   : > { %790 = vmatprep.subr.bf16.mxu1 %v1148_v0  ;;  %807 = vmatpush3.bf16.msra.mxu0 %v930_v13 }
  0x99   : > { %808 = vmatprep.subr.bf16.mxu0 %v1148_v0 }
  0x9b   : > { %791 = vmatpush3.bf16.msra.mxu1 %v924_v7 }
  0x9c   : > { %792 = vmatprep.subr.bf16.mxu1 %v1148_v0  ;;  %809 = vmatpush3.bf16.msra.mxu0 %v931_v14 }
  0x9d   : > { %810 = vmatprep.subr.bf16.mxu0 %v1148_v0 }
  0x9f   : > { %793 = vmatpush3.bf16.msra.mxu1 %v925_v8 }
  0xa0   : > { %794 = vmatprep.subr.bf16.mxu1 %v1148_v0  ;;  %811 = vmatpush3.bf16.msra.mxu0 %v932_v15 }
  0xa1   : > { %812 = vmatprep.subr.bf16.mxu0 %v1148_v0 }
  0xa3   : > { %795 = vmatpush3.bf16.msra.mxu1 %v926_v9 }
  0xa4   : > { %796 = vmatprep.subr.bf16.mxu1 %v1148_v0  ;;  %813 = vmatpush3.bf16.msra.mxu0 %v933_v16 }
  0xa5   : > { %814 = vmatprep.subr.bf16.mxu0 %v1148_v0 }
  0xa7   : > { %797 = vmatpush3.bf16.msra.mxu1 %v927_v10 }
  0xa8   : > { %815 = vmatpush3.bf16.msra.mxu0 %v934_v22 }
  0xa9   : > { %816 = vmatprep.subr.bf16.mxu0 %v1148_v0 }
  0xac   : > { %817 = vmatpush3.bf16.msra.mxu0 %v935_v23 }
 0x161   : > { %v362_v17 = vpop.f32.mrb[0].mxu0 }
 0x162   : > { %v374_v18 = vpack.c.bf16 %v362_v17, %v362_v17  ;;  %v780_v19 = vpop.f32.mrb[1].mxu0 }
 0x163   : > { %v365_v20 = vpop.f32.mrb[2].mxu0 }
 0x164   : > { %v781_v21 = vpop.f32.mrb[3].mxu0  ;;  %799 = vmatmul.mubr.bf16.vlgmr.msra.gmra.mrb[0].mxu1 %v374_v18 }
 0x237   : > { %v480_v25 = vpop.f32.mrb[0].mxu1 }
 0x238   : > { %v481_v26 = vadd.f32 %v735_v24, %v480_v25  ;;  %v800_v27 = vpop.f32.mrb[1].mxu1 }
 0x239   : > { %v483_v28 = vpop.f32.mrb[2].mxu1 }
 0x23a   : > { %v486_v29 = vmax.f32 %v481_v26, 0.0  ;;  %v801_v30 = vpop.f32.mrb[3].mxu1 }
 0x23c   : > { %v487_v31 = vpack.c.bf16 %v486_v29, %v486_v29 }
 0x23e   : > { %819 = vmatmul.mubr.bf16.vlgmr.msra.gmra.mrb[4].mxu0 %v487_v31 }
 0x311   : > { %v586_v32 = vpop.f32.mrb[4].mxu0 }
 0x312   : > { %v592_v33 = vpack.c.bf16 %v586_v32, %v586_v32  ;;  %v820_v34 = vpop.f32.mrb[5].mxu0 }
 0x313   : > { %v589_v35 = vpop.f32.mrb[6].mxu0 }
 0x314   : > { %593 = vst [vmem:[%s306_s27] sm:$0xf] %v592_v33  ;;  %v821_v36 = vpop.f32.mrb[7].mxu0 }
 0x315   : > { %1063 = shalt.err (!%p1060_p0)
}
 0x316   : > { %s1064_s25 = scalar_lea.hbm %s1423_s12, 64  ;;  %s1068_s24 = scalar_lea.hbm %s1477_s5, 128 }
 0x317   : > { %p1065_p4 = scmp.ne.s32.totalorder %s1423_s12, %s1064_s25  ;;  %p1069_p1 = scmp.lt.u32.totalorder %s1423_s12, %s1477_s5 }
 0x318   : > { %p1070_p12 = scmp.lt.u32.totalorder %s1068_s24, %s1064_s25  ;;  %p1072_p13 = scmp.lt.u32.totalorder %s1064_s25, %s1423_s12 }
 0x319   : > { %p1066_p2 = pnand %p1065_p4, %p1341_p10 }
 0x31a   : > { %p1071_p11 = por %p1070_p12, %p1069_p1 }
 0x31b   : > { %p1067_p8 = pneg %p1066_p2 }
 0x31c   : > { %p1073_p6 = por %p1072_p13, %p1071_p11 }
 0x31e   : > { %p1074_p3 = pnand %p1073_p6, %p1067_p8 }
 0x320   : > { %1077 = shalt.err (!%p1074_p3)
}
 0x321   : > { %836 = dma.vmem_to_hbm [thread:$0]  (%p1341_p10), %s1425_s6, 64, %s1423_s12, %s595_s21  }
 0x322 PF: > { %s1499_s28 = sld [smem:[#allocation16_spill]]  ;;  %s1500_s30 = sld [smem:[#allocation17_spill]] }
 0x323   : > { %p1502_p7 = scmp.ge.s32.totalorder %s1140_s23, 2 }
 0x328   : > { %s620_s27 = sand.u32 1, %s1499_s28   ;;  %p1501_p5 = scmp.ne.s32.totalorder %s1500_s30, 0 }
 0x329   : > { %s621_s9 = scalar_lea.sflag [#allocation5], %s620_s27 }
 0x32a   : > { %p853_p9 = pnand %p1502_p7, %p1501_p5 }
 0x32c   : > { %1115 = dma.done.wait (!%p853_p9), %s621_s9, 64  }
 0x32d   : > { %1117 = vsyncadd (!%p853_p9), %s621_s9, 4294967232  ;;  %s23_s23 = sadd.s32 1, %s1140_s23   ;;  %s1503_s18 = smov %s1124_s19 }
 0x32e   : > { %p20_p0 = scmp.ge.s32.totalorder %s23_s23, 4   ;;  %s1504_s19 = smov %s1128_s20 }
 0x32f   : > { %s1505_s20 = smov %s1353_s13  ;;  %s1506_s21 = smov %s1136_s22 }
 0x330   : > { %s1507_s22 = smov %s1509_s8  ;;  %22 = sbr.rel (!%p20_p0) target bundleno = 8 (0x8), region = 106 }
 0x337   :  { %626 = vsyncpa [#allocation4], 1 }
 0x338   :  { %628 = vsyncpa [#allocation4 + $0x1], 1 }
 0x339   :  { %629 = vsyncpa [#allocation7], 1 }
 0x33a   :  { %630 = vsyncpa [#allocation10], 1 }
 0x33b   :  { %631 = vsyncpa [#allocation5], 1 }
 0x33c   :  { %633 = vsyncpa [#allocation5 + $0x1], 1 }

</bundles_post_ra>
